<compile_context>
chip_gen: v6e
topology: v6e:2x2x1
jax: 0.10.0
libtpu: 0.0.40
codegen_flags: <defaults>
</compile_context>

<pallas_src>
import math

import jax
import jax.numpy as jnp
from jax.experimental import pallas as pl
from jax.experimental.pallas import tpu as pltpu


# ---------------------------------------------------------------------------
# Kernel: straight copy of one lane-dense (block_rows, 128) tile.
# ---------------------------------------------------------------------------
def _identity_kernel(x_ref, o_ref):
    o_ref[...] = x_ref[...]


# ---------------------------------------------------------------------------
# Pallas copy path (only used when a real kernel launch is requested).
# ---------------------------------------------------------------------------
def _identity_pallas(x):
    LANE = 128
    itemsize = jnp.dtype(x.dtype).itemsize
    # dtype-aware sublane alignment: 8 rows for 32-bit, 16 for 16-bit, 32 for 8-bit.
    sublane = max(8, 32 // max(itemsize, 1))

    n = math.prod(x.shape) if x.shape else 1
    if n == 0 or n % LANE != 0:
        # Tail is not lane-dense; the op is a pure identity, so skip the kernel
        # rather than paying pad/slice HBM passes.
        return x

    rows = n // LANE
    total_bytes = n * itemsize

    # Byte-capped tile: 4 MiB per block => 2 buffers x (in + out) <= 16 MiB,
    # comfortably under v5e's 16 MiB / v7x's 32 MiB scoped-VMEM defaults.
    TILE_BYTES = 4 * 1024 * 1024
    cap_rows = max(sublane, TILE_BYTES // (LANE * itemsize))

    if rows <= cap_rows:
        # Single full-array block: legal for any row count (block == full dims).
        block_rows = rows
        # v7x: for multi-MiB copies give the parallel axis >=2 steps so both
        # TensorCores issue DMAs (neutral on single-TC v5e / v6e).
        if total_bytes >= (2 * 1024 * 1024) and rows % (2 * sublane) == 0:
            block_rows = rows // 2
    else:
        if rows % sublane != 0:
            # Large but sublane-misaligned: identity is free, skip the kernel.
            return x
        block_rows = (cap_rows // sublane) * sublane

    grid = (pl.cdiv(rows, block_rows),)
    x2 = jnp.reshape(x, (rows, LANE))

    out2 = pl.pallas_call(
        _identity_kernel,
        out_shape=jax.ShapeDtypeStruct((rows, LANE), x.dtype),
        grid_spec=pltpu.PrefetchScalarGridSpec(
            num_scalar_prefetch=0,
            grid=grid,
            in_specs=[pl.BlockSpec((block_rows, LANE), lambda i: (i, 0))],
            out_specs=pl.BlockSpec((block_rows, LANE), lambda i: (i, 0)),
        ),
        # Output aliases the only tensor input: no separate output allocation,
        # and XLA may elide the copy entirely when the input is donated.
        input_output_aliases={0: 0},
        cost_estimate=pl.CostEstimate(
            flops=0, transcendentals=0, bytes_accessed=2 * total_bytes
        ),
        compiler_params=pltpu.CompilerParams(
            dimension_semantics=("parallel",),
        ),
    )(x2)

    return jnp.reshape(out2, x.shape)


# ---------------------------------------------------------------------------
# Wrapper: IdentityOp.forward(x) -> x.
# ---------------------------------------------------------------------------
def identity_forward(x, use_kernel=False):
    if not use_kernel:
        # Highest-value optimization: a pure identity should launch nothing.
        return x
    return _identity_pallas(x)


# ---------------------------------------------------------------------------
# Pure-JAX reference (identity).
# ---------------------------------------------------------------------------
def _reference(x):
    return x


if __name__ == "__main__":
    # Small shapes consistent with the module usage: batch=2, channels=4, 16x16.
    N, C, H, W = 2, 4, 16, 16
    key = jax.random.PRNGKey(0)
    x = jax.random.normal(key, (N, C, H, W), dtype=jnp.float32)

    # Default (optimal) path: zero-cost short circuit.
    fast = identity_forward(x)
    assert fast.shape == x.shape and fast.dtype == x.dtype

    # Explicit kernel path (lane-dense VMEM copy) exercised once.
    out = identity_forward(x, use_kernel=True)
    out = jax.block_until_ready(out)

    ref = _reference(x)
    assert out.shape == x.shape
    assert out.dtype == x.dtype
    assert jnp.array_equal(out, ref), float(jnp.max(jnp.abs(out - ref)))

    print("KERNEL_OK")
</pallas_src>

<mosaic_0001>
module attributes {stable_mosaic.version = 11 : i64} {
  func.func @_identity_kernel(%arg0: i32, %arg1: memref<16x128xf32, #tpu.memory_space<vmem>>, %arg2: memref<16x128xf32, #tpu.memory_space<vmem>>) attributes {dimension_semantics = [#tpu.dimension_semantics<parallel>], iteration_bounds = array<i64: 1>, scalar_prefetch = 0 : i64, scratch_operands = 0 : i64, tpu.core_type = #tpu.core_type<tc>, window_params = [{transform_indices = @transform_0, window_bounds = array<i64: 16, 128>}, {transform_indices = @transform_1, window_bounds = array<i64: 16, 128>}]} {
    %c0 = arith.constant 0 : index
    %c0_0 = arith.constant 0 : index
    %0 = vector.load %arg1[%c0, %c0_0] : memref<16x128xf32, #tpu.memory_space<vmem>>, vector<16x128xf32>
    %c0_1 = arith.constant 0 : index
    %c0_2 = arith.constant 0 : index
    %1 = vector.load %arg2[%c0_1, %c0_2] : memref<16x128xf32, #tpu.memory_space<vmem>>, vector<16x128xf32>
    tpu.vector_store %arg2[%c0_1, %c0_2], %0 {strides = array<i32>} : memref<16x128xf32, #tpu.memory_space<vmem>>, vector<16x128xf32>,
    return
  }
  func.func @transform_0(%arg0: i32) -> (i32, i32) {
    %c0_i32 = arith.constant 0 : i32
    %c0_i32_0 = arith.constant 0 : i32
    return %arg0, %c0_i32 : i32, i32
  }
  func.func @transform_1(%arg0: i32) -> (i32, i32) {
    %c0_i32 = arith.constant 0 : i32
    %c0_i32_0 = arith.constant 0 : i32
    return %arg0, %c0_i32 : i32, i32
  }
}

</mosaic_0001>

<bundles_post_ra>
// kernel: tpu_custom_call.1
= control target key start
LH: loop header
LB: loop body
LE: loop exit
PB: predicated region body
PF: predicated region fallthrough
CT: control target
= control target key end

     0   :  { %6 = vsyncpa [#allocation3], 0  ;;  %s112_s0 = inlined_call_operand.hbm [shape: f32[16,128], index: 0, kind: input, shape index: {}, may-alias: {0,1}]   ;;  %s113_s1 = inlined_call_operand.hbm [shape: f32[16,128], index: 1, kind: output, shape index: {}, may-alias: {0,1}]  }
   0x1   :  { %7 = vsyncpa [#allocation4], 0  ;;  %s92_s6 = smov [#allocation2]  }
   0x2   :  { %s13_s7 = sshll.u32 %s92_s6, 4  ;;  %s14_s7 = int_to_ptr.vmem [resolvable:$true] %s13_s7 }
   0x3   :  { %s56_s8 = scalar_lea.vmem %s14_s7, 256  ;;  %p61_p1 = scmp.lt.s32.totalorder %s14_s7, %s14_s7 }
   0x4   :  { %p57_p0 = scmp.ne.s32.totalorder %s14_s7, %s56_s8  ;;  %p62_p2 = scmp.lt.s32.totalorder %s56_s8, %s56_s8 }
   0x6   :  { %p63_p3 = por %p62_p2, %p61_p1 }
   0x8   :  { %p64_p4 = pnand %p63_p3, %p57_p0 }
   0xa   :  { %67 = shalt.err (!%p64_p4)
}
   0xb   :  { %s93_s9 = smov 128   ;;  %s94_s10 = smov 8  }
   0xc   :  { %19 = dma.hbm_to_vmem [thread:$0]  %s112_s0, 256, %s14_s7, [#allocation3], %s93_s9, %s93_s9, %s94_s10  }
   0xd   :  { %88 = dma.done.wait [#allocation3], 256  }
   0xe   :  { %89 = vsyncadd [#allocation3], 4294967040  ;;  %s95_s13 = smov [#allocation5]   ;;  %v23_v0 = vld [vmem:[#allocation2] sm:$0xff]  ;;  %v24_v1 = vld [vmem:[#allocation2 + $0x8] sm:$0xff] }
   0xf   :  { %s32_s14 = sshll.u32 %s95_s13, 4  ;;  %25 = vst [vmem:[#allocation5] sm:$0xff] %v23_v0  ;;  %26 = vst [vmem:[#allocation5 + $0x8] sm:$0xff] %v24_v1  ;;  %s33_s14 = int_to_ptr.vmem [resolvable:$true] %s32_s14 }
  0x10   :  { %s68_s15 = scalar_lea.vmem %s33_s14, 256  ;;  %p73_p6 = scmp.lt.s32.totalorder %s33_s14, %s33_s14 }
  0x11   :  { %p69_p5 = scmp.ne.s32.totalorder %s33_s14, %s68_s15  ;;  %p74_p7 = scmp.lt.s32.totalorder %s68_s15, %s68_s15 }
  0x13   :  { %p75_p8 = por %p74_p7, %p73_p6 }
  0x15   :  { %p76_p9 = pnand %p75_p8, %p69_p5 }
  0x17   :  { %79 = shalt.err (!%p76_p9)
}
  0x18   :  { %38 = dma.vmem_to_hbm [thread:$0]  %s33_s14, 256, %s113_s1, [#allocation4], %s93_s9, %s93_s9, %s94_s10  }
  0x19   :  { %90 = dma.done.wait [#allocation4], 256  }
  0x1a   :  { %91 = vsyncadd [#allocation4], 4294967040 }
  0x1b   :  { %42 = vsyncpa [#allocation3], 1 }
  0x1c   :  { %43 = vsyncpa [#allocation4], 1 }

</bundles_post_ra>
